<compile_context>
chip_gen: v7x
topology: tpu7x:2x2x1
jax: 0.10.0
libtpu: 0.0.40
codegen_flags: <defaults>
</compile_context>

<pallas_src>
import functools

import jax
import jax.numpy as jnp
import numpy as np
from jax.experimental import pallas as pl
from jax.experimental.pallas import tpu as pltpu


def _global_pointer_kernel(h_ref, w_ref, p_ref, o_ref, *, num_heads, head_size):
    # h_ref: (1, S, H)   w_ref: (H, D)   p_ref: (3, D) = [bias, gamma', beta']
    # o_ref: (1, num_heads, S, S)
    # dense: x = hidden @ W + b
    x = jnp.dot(h_ref[0], w_ref[...],
                preferred_element_type=jnp.float32) + p_ref[0:1, :]

    # LayerNorm over last dim (nn.LayerNorm default eps=1e-5); dropout(p=0.1)
    # is identity in eval mode.
    mu = jnp.mean(x, axis=-1, keepdims=True)
    var = jnp.mean(jnp.square(x - mu), axis=-1, keepdims=True)
    xn = (x - mu) * jax.lax.rsqrt(var + 1e-5)
    # gamma'/beta' already carry the folded (non-rotating) RoPE scale.
    xn = xn * p_ref[1:2, :] + p_ref[2:3, :]

    two_hs = 2 * head_size
    # Per-head q/v column slices stacked along a leading (batch) axis.
    q = jnp.stack(
        [xn[:, h * two_hs: h * two_hs + head_size] for h in range(num_heads)],
        axis=0)                                               # (nh, S, hs)
    v = jnp.stack(
        [xn[:, h * two_hs + head_size: (h + 1) * two_hs] for h in range(num_heads)],
        axis=0)                                               # (nh, S, hs)

    # Single batched contraction on the MXU: scores[h, i, j] = q[h,i,:] . v[h,j,:]
    # (contract last dims directly — no explicit v.T / XLU transpose).
    scores = jax.lax.dot_general(
        q, v,
        dimension_numbers=(((2,), (2,)), ((0,), (0,))),
        preferred_element_type=jnp.float32)                    # (nh, S, S)

    # One store of the whole per-batch score slab.
    o_ref[0] = scores * np.float32(1.0 / np.sqrt(head_size))


def global_pointer_scores(hidden, W, b, gamma, beta, cos, sin, trans,
                          *, num_heads, head_size):
    B, S, H = hidden.shape
    D = num_heads * 2 * head_size
    assert W.shape == (H, D)

    # Fold the reference "RoPE" (a pure per-column scale) into the LN affine:
    #   (xn*gamma + beta) * rope == xn*(gamma*rope) + (beta*rope)
    rope = (cos + trans * sin).astype(jnp.float32)             # (head_size,)
    rope_tiled = jnp.tile(rope, 2 * num_heads)                 # (D,): q & v cols of every head
    params = jnp.stack([b.astype(jnp.float32),
                        (gamma * rope_tiled).astype(jnp.float32),
                        (beta * rope_tiled).astype(jnp.float32)], axis=0)  # (3, D)

    kernel = functools.partial(_global_pointer_kernel,
                               num_heads=num_heads, head_size=head_size)

    return pl.pallas_call(
        kernel,
        out_shape=jax.ShapeDtypeStruct((B, num_heads, S, S), jnp.float32),
        grid_spec=pltpu.PrefetchScalarGridSpec(
            num_scalar_prefetch=0,
            grid=(B,),
            in_specs=[
                pl.BlockSpec((1, S, H), lambda bi: (bi, 0, 0)),
                pl.BlockSpec((H, D), lambda bi: (0, 0)),
                pl.BlockSpec((3, D), lambda bi: (0, 0)),
            ],
            out_specs=pl.BlockSpec((1, num_heads, S, S),
                                   lambda bi: (bi, 0, 0, 0)),
        ),
        compiler_params=pltpu.CompilerParams(
            dimension_semantics=("parallel",)),
    )(hidden, W, params)


def _reference(hidden, W, b, gamma, beta, cos, sin, trans,
               *, num_heads, head_size):
    """Pure-JAX reference mirroring GlobalPointer.forward (eval mode), unfolded."""
    B, S, H = hidden.shape
    x = hidden @ W + b
    mu = jnp.mean(x, axis=-1, keepdims=True)
    var = jnp.mean(jnp.square(x - mu), axis=-1, keepdims=True)
    x = (x - mu) / jnp.sqrt(var + 1e-5) * gamma + beta
    x = x.reshape(B, S, num_heads, 2 * head_size).transpose(0, 2, 1, 3)
    q, v = x[..., :head_size], x[..., head_size:]
    q = q * cos + q * trans * sin
    v = v * cos + v * trans * sin
    return jnp.einsum("bhid,bhjd->bhij", q, v) / np.sqrt(head_size)


if __name__ == "__main__":
    # Small shapes consistent with the module's forward.
    B, S, H = 2, 8, 32              # batch, seq_len, hidden_size
    num_heads, head_size = 4, 16
    D = num_heads * 2 * head_size   # 128

    key = jax.random.PRNGKey(0)
    k_hid, k_w, k_b = jax.random.split(key, 3)

    # Synthesized BERT last_hidden_state (see TODO above).
    hidden = jax.random.normal(k_hid, (B, S, H), dtype=jnp.float32)
    attention_mask = jnp.ones((B, S), dtype=jnp.float32)  # unused by forward

    # Deterministic GlobalPointer parameters.
    W = jax.random.normal(k_w, (H, D), dtype=jnp.float32) * (1.0 / np.sqrt(H))
    b = jax.random.normal(k_b, (D,), dtype=jnp.float32) * 0.01
    gamma = jnp.ones((D,), dtype=jnp.float32)
    beta = jnp.zeros((D,), dtype=jnp.float32)

    # RoPE constants exactly as in __init__ (if_rope=True).
    idx = np.arange(0, head_size // 2, dtype=np.float32)
    idx = np.power(np.float32(10000.0), -2.0 * idx / head_size)
    emb_cos = jnp.asarray(np.repeat(np.cos(idx), 2), dtype=jnp.float32)
    emb_sin = jnp.asarray(np.repeat(np.sin(idx), 2), dtype=jnp.float32)
    trans4tensor = jnp.asarray(np.array([-1.0, 1.0] * (head_size // 2),
                                        dtype=np.float32))

    scores = global_pointer_scores(
        hidden, W, b, gamma, beta, emb_cos, emb_sin, trans4tensor,
        num_heads=num_heads, head_size=head_size)
    scores = jax.block_until_ready(scores)

    ref = _reference(hidden, W, b, gamma, beta, emb_cos, emb_sin, trans4tensor,
                     num_heads=num_heads, head_size=head_size)
    np.testing.assert_allclose(np.asarray(scores), np.asarray(ref),
                               rtol=1e-4, atol=1e-4)
    assert scores.shape == (B, num_heads, S, S)
    print("KERNEL_OK")
</pallas_src>

<mosaic_0001>
module attributes {stable_mosaic.version = 11 : i64} {
  func.func @_global_pointer_kernel(%arg0: i32, %arg1: memref<1x8x32xf32, #tpu.memory_space<vmem>>, %arg2: memref<32x128xf32, #tpu.memory_space<vmem>>, %arg3: memref<3x128xf32, #tpu.memory_space<vmem>>, %arg4: memref<1x4x8x8xf32, #tpu.memory_space<vmem>>) attributes {dimension_semantics = [#tpu.dimension_semantics<parallel>], iteration_bounds = array<i64: 2>, scalar_prefetch = 0 : i64, scratch_operands = 0 : i64, tpu.core_type = #tpu.core_type<tc>, window_params = [{transform_indices = @transform_0, window_bounds = array<i64: 1, 8, 32>}, {pipeline_mode = #tpu.pipeline_mode<synchronous>, transform_indices = @transform_1, window_bounds = array<i64: 32, 128>}, {pipeline_mode = #tpu.pipeline_mode<synchronous>, transform_indices = @transform_2, window_bounds = array<i64: 3, 128>}, {transform_indices = @transform_3, window_bounds = array<i64: 1, 4, 8, 8>}]} {
    %c0 = arith.constant 0 : index
    %c0_0 = arith.constant 0 : index
    %c0_1 = arith.constant 0 : index
    %0 = vector.load %arg1[%c0, %c0_0, %c0_1] : memref<1x8x32xf32, #tpu.memory_space<vmem>>, vector<1x8x32xf32>
    %1 = vector.shape_cast %0 : vector<1x8x32xf32> to vector<8x32xf32>
    %c0_2 = arith.constant 0 : index
    %c0_3 = arith.constant 0 : index
    %2 = vector.load %arg2[%c0_2, %c0_3] : memref<32x128xf32, #tpu.memory_space<vmem>>, vector<32x128xf32>
    %cst = arith.constant dense<0.000000e+00> : vector<8x128xf32>
    %3 = tpu.matmul %1, %2, %cst {dimension_numbers = #tpu.dot_dimension_numbers<[1], [0], [0], [1], [0, 0, 1, 1], [], []>} : vector<8x32xf32>, vector<32x128xf32>, vector<8x128xf32> -> vector<8x128xf32>
    %c0_4 = arith.constant 0 : index
    %c0_5 = arith.constant 0 : index
    %4 = vector.load %arg3[%c0_4, %c0_5] : memref<3x128xf32, #tpu.memory_space<vmem>>, vector<1x128xf32>
    %5 = vector.broadcast %4 : vector<1x128xf32> to vector<8x128xf32>
    %6 = arith.addf %3, %5 : vector<8x128xf32>
    %cst_6 = arith.constant dense<0.000000e+00> : vector<8xf32>
    %7 = vector.multi_reduction <add>, %6, %cst_6 [1] : vector<8x128xf32> to vector<8xf32>
    %8 = vector.shape_cast %7 : vector<8xf32> to vector<8x1xf32>
    %cst_7 = arith.constant 1.280000e+02 : f32
    %9 = vector.broadcast %cst_7 : f32 to vector<8x1xf32>
    %10 = arith.divf %8, %9 : vector<8x1xf32>
    %11 = vector.broadcast %10 : vector<8x1xf32> to vector<8x128xf32>
    %12 = arith.subf %6, %11 : vector<8x128xf32>
    %13 = arith.mulf %12, %12 : vector<8x128xf32>
    %cst_8 = arith.constant dense<0.000000e+00> : vector<8xf32>
    %14 = vector.multi_reduction <add>, %13, %cst_8 [1] : vector<8x128xf32> to vector<8xf32>
    %15 = vector.shape_cast %14 : vector<8xf32> to vector<8x1xf32>
    %cst_9 = arith.constant 1.280000e+02 : f32
    %16 = vector.broadcast %cst_9 : f32 to vector<8x1xf32>
    %17 = arith.divf %15, %16 : vector<8x1xf32>
    %18 = vector.broadcast %10 : vector<8x1xf32> to vector<8x128xf32>
    %19 = arith.subf %6, %18 : vector<8x128xf32>
    %cst_10 = arith.constant 9.99999974E-6 : f32
    %20 = vector.broadcast %cst_10 : f32 to vector<8x1xf32>
    %21 = arith.addf %17, %20 : vector<8x1xf32>
    %22 = math.rsqrt %21 : vector<8x1xf32>
    %23 = vector.broadcast %22 : vector<8x1xf32> to vector<8x128xf32>
    %24 = arith.mulf %19, %23 : vector<8x128xf32>
    %c1 = arith.constant 1 : index
    %c0_11 = arith.constant 0 : index
    %25 = vector.load %arg3[%c1, %c0_11] : memref<3x128xf32, #tpu.memory_space<vmem>>, vector<1x128xf32>
    %26 = vector.broadcast %25 : vector<1x128xf32> to vector<8x128xf32>
    %27 = arith.mulf %24, %26 : vector<8x128xf32>
    %c2 = arith.constant 2 : index
    %c0_12 = arith.constant 0 : index
    %28 = vector.load %arg3[%c2, %c0_12] : memref<3x128xf32, #tpu.memory_space<vmem>>, vector<1x128xf32>
    %29 = vector.broadcast %28 : vector<1x128xf32> to vector<8x128xf32>
    %30 = arith.addf %27, %29 : vector<8x128xf32>
    %31 = vector.extract_strided_slice %30 {offsets = [0, 0], sizes = [8, 16], strides = [1, 1]} : vector<8x128xf32> to vector<8x16xf32>
    %32 = vector.extract_strided_slice %30 {offsets = [0, 32], sizes = [8, 16], strides = [1, 1]} : vector<8x128xf32> to vector<8x16xf32>
    %33 = vector.extract_strided_slice %30 {offsets = [0, 64], sizes = [8, 16], strides = [1, 1]} : vector<8x128xf32> to vector<8x16xf32>
    %34 = vector.extract_strided_slice %30 {offsets = [0, 96], sizes = [8, 16], strides = [1, 1]} : vector<8x128xf32> to vector<8x16xf32>
    %35 = vector.shape_cast %31 : vector<8x16xf32> to vector<1x8x16xf32>
    %36 = vector.shape_cast %32 : vector<8x16xf32> to vector<1x8x16xf32>
    %37 = vector.shape_cast %33 : vector<8x16xf32> to vector<1x8x16xf32>
    %38 = vector.shape_cast %34 : vector<8x16xf32> to vector<1x8x16xf32>
    %39 = tpu.concatenate %35, %36, %37, %38 in 0 : vector<1x8x16xf32>, vector<1x8x16xf32>, vector<1x8x16xf32>, vector<1x8x16xf32> -> vector<4x8x16xf32>
    %40 = vector.extract_strided_slice %30 {offsets = [0, 16], sizes = [8, 16], strides = [1, 1]} : vector<8x128xf32> to vector<8x16xf32>
    %41 = vector.extract_strided_slice %30 {offsets = [0, 48], sizes = [8, 16], strides = [1, 1]} : vector<8x128xf32> to vector<8x16xf32>
    %42 = vector.extract_strided_slice %30 {offsets = [0, 80], sizes = [8, 16], strides = [1, 1]} : vector<8x128xf32> to vector<8x16xf32>
    %43 = vector.extract_strided_slice %30 {offsets = [0, 112], sizes = [8, 16], strides = [1, 1]} : vector<8x128xf32> to vector<8x16xf32>
    %44 = vector.shape_cast %40 : vector<8x16xf32> to vector<1x8x16xf32>
    %45 = vector.shape_cast %41 : vector<8x16xf32> to vector<1x8x16xf32>
    %46 = vector.shape_cast %42 : vector<8x16xf32> to vector<1x8x16xf32>
    %47 = vector.shape_cast %43 : vector<8x16xf32> to vector<1x8x16xf32>
    %48 = tpu.concatenate %44, %45, %46, %47 in 0 : vector<1x8x16xf32>, vector<1x8x16xf32>, vector<1x8x16xf32>, vector<1x8x16xf32> -> vector<4x8x16xf32>
    %cst_13 = arith.constant dense<0.000000e+00> : vector<4x8x8xf32>
    %49 = tpu.matmul %39, %48, %cst_13 {dimension_numbers = #tpu.dot_dimension_numbers<[2], [2], [1], [1], [0, 0, 0, 1, 1, 1], [0], [0]>} : vector<4x8x16xf32>, vector<4x8x16xf32>, vector<4x8x8xf32> -> vector<4x8x8xf32>
    %cst_14 = arith.constant 2.500000e-01 : f32
    %50 = vector.broadcast %cst_14 : f32 to vector<4x8x8xf32>
    %51 = arith.mulf %49, %50 : vector<4x8x8xf32>
    %c0_15 = arith.constant 0 : index
    %c0_16 = arith.constant 0 : index
    %c0_17 = arith.constant 0 : index
    %c0_18 = arith.constant 0 : index
    %52 = vector.load %arg4[%c0_15, %c0_16, %c0_17, %c0_18] : memref<1x4x8x8xf32, #tpu.memory_space<vmem>>, vector<1x4x8x8xf32>
    %53 = vector.shape_cast %52 : vector<1x4x8x8xf32> to vector<4x8x8xf32>
    %54 = vector.shape_cast %51 : vector<4x8x8xf32> to vector<1x4x8x8xf32>
    tpu.vector_store %arg4[%c0_15, %c0_16, %c0_17, %c0_18], %54 {strides = array<i32>} : memref<1x4x8x8xf32, #tpu.memory_space<vmem>>, vector<1x4x8x8xf32>,
    return
  }
  func.func @transform_0(%arg0: i32) -> (i32, i32, i32) {
    %c0_i32 = arith.constant 0 : i32
    %c0_i32_0 = arith.constant 0 : i32
    %c0_i32_1 = arith.constant 0 : i32
    return %arg0, %c0_i32, %c0_i32_0 : i32, i32, i32
  }
  func.func @transform_1(%arg0: i32) -> (i32, i32) {
    %c0_i32 = arith.constant 0 : i32
    %c0_i32_0 = arith.constant 0 : i32
    %c0_i32_1 = arith.constant 0 : i32
    return %c0_i32, %c0_i32_0 : i32, i32
  }
  func.func @transform_2(%arg0: i32) -> (i32, i32) {
    %c0_i32 = arith.constant 0 : i32
    %c0_i32_0 = arith.constant 0 : i32
    %c0_i32_1 = arith.constant 0 : i32
    return %c0_i32, %c0_i32_0 : i32, i32
  }
  func.func @transform_3(%arg0: i32) -> (i32, i32, i32, i32) {
    %c0_i32 = arith.constant 0 : i32
    %c0_i32_0 = arith.constant 0 : i32
    %c0_i32_1 = arith.constant 0 : i32
    %c0_i32_2 = arith.constant 0 : i32
    return %arg0, %c0_i32, %c0_i32_0, %c0_i32_1 : i32, i32, i32, i32
  }
}

</mosaic_0001>

<bundles_post_ra>
// kernel: tpu_custom_call.1
= control target key start
LH: loop header
LB: loop body
LE: loop exit
PB: predicated region body
PF: predicated region fallthrough
CT: control target
= control target key end

     0   :  { %8 = vsyncpa [#allocation3], 0  ;;  %s1273_s0 = inlined_call_operand.hbm [shape: f32[2,8,32], index: 0, kind: input, shape index: {}]   ;;  %s1274_s1 = inlined_call_operand.hbm [shape: f32[32,128], index: 1, kind: input, shape index: {}]   ;;  %s1275_s2 = inlined_call_operand.vmem [shape: f32[3,128], index: 2, kind: input, shape index: {}]   ;;  %s1276_s3 = inlined_call_operand.hbm [shape: f32[2,4,8,8], index: 3, kind: output, shape index: {}]  }
   0x1   :  { %10 = vsyncpa [#allocation3 + $0x1], 0 }
   0x2   :  { %11 = vsyncpa [#allocation6], 0 }
   0x3   :  { %12 = vsyncpa [#allocation4], 0 }
   0x4   :  { %14 = vsyncpa [#allocation4 + $0x1], 0  ;;  %s1039_s12 = smov 0   ;;  %s1041_s13 = smov 0  }
   0x5   :  { %s1043_s14 = smov 0   ;;  %s1045_s15 = smov 0  }
   0x6 LB: > { %s1060_s16 = sadd.s32 4294967295, %s1003_s15   ;;  %s727_s17 = sadd.s32 4294967294, %s1003_s15   ;;  %s1003_s15 = sphi %s1045_s15, %s1296_s15   ;;  %s999_s14 = sphi %s1043_s14, %s1295_s14   ;;  %s995_s13 = sphi %s1041_s13, %s1294_s13   ;;  %s991_s12 = sphi %s1039_s12, %s1293_s12  }
   0x7   : > { %p40_p0 = scmp.ne.s32.totalorder %s995_s13, %s991_s12  ;;  %p1277_p1 = scmp.eq.s32.totalorder %s1060_s16, 0 }
   0x8   : > { %p112_p3 = scmp.eq.s32.totalorder %s727_s17, 1  ;;  %p728_p5 = scmp.ge.s32.totalorder %s1003_s15, 1 }
   0x9   : > { %p1069_p4 = por %p1277_p1, %p40_p0  ;;  %p119_p7 = scmp.lt.s32.totalorder %s1003_s15, 3 }
   0xa   : > { %p1074_p6 = por %p112_p3, %p40_p0  ;;  %s1005_s21 = smov [#allocation5]  }
   0xb   : > { %s1280_s18 = scalar_select %p1069_p4, 1, 0 }
   0xc   : > { %s1281_s19 = scalar_select %p1074_p6, 1, 0 }
   0xd   : > { %p1079_p8 = pnand %p728_p5, %p119_p7  ;;  %s131_s22 = sshll.u32 %s1005_s21, 4  ;;  %s1083_s22 = int_to_ptr.vmem [resolvable:$true] %s131_s22 }
   0xe   : > { %s1095_s24 = sadd.s32 1, %s1003_s15   ;;  %s27_s25 = sadd.s32 1, %s999_s14 }
   0xf   : > { %s1282_s20 = scalar_select %p1079_p8, 1, 0 }
  0x10   : > { %p813_p9 = pneg %p1079_p8  ;;  %s24_s26 = ssub.s32 %s1003_s15, %s1095_s24 }
  0x11   : > { %s875_s29 = scalar_lea.hbm %s1274_s1, 512 }
  0x12   : > { %p1090_p11 = pnand %p813_p9, %p1277_p1  ;;  %p876_p12 = scmp.ne.s32.totalorder %s1274_s1, %s875_s29 }
  0x13   : > { %p882_p5 = scmp.lt.u32.totalorder %s875_s29, %s1274_s1 }
  0x14   : > { %p877_p13 = pneg %p1090_p11 }
  0x16   : > { %p878_p0 = pnand %p877_p13, %p876_p12 }
  0x18   : > { %p879_p3 = pneg %p878_p0 }
  0x1a   : > { %p884_p7 = pnand %p882_p5, %p879_p3 }
  0x1c   : > { %887 = shalt.err (!%p884_p7)
}
  0x1d   : > { %s888_s7 = scalar_lea.vmem %s1083_s22, 512  ;;  %p896_p2 = scmp.lt.s32.totalorder %s1083_s22, %s1083_s22 }
  0x1e   : > { %p889_p9 = scmp.ne.s32.totalorder %s1083_s22, %s888_s7  ;;  %p897_p6 = scmp.lt.s32.totalorder %s888_s7, %s888_s7 }
  0x20   : > { %p891_p10 = pnand %p889_p9, %p877_p13  ;;  %p898_p4 = por %p897_p6, %p896_p2 }
  0x22   : > { %p892_p1 = pneg %p891_p10 }
  0x24   : > { %p899_p8 = pnand %p898_p4, %p892_p1 }
  0x26   : > { %902 = shalt.err (!%p899_p8)
}
  0x27   : > { %s1006_s8 = smov 128   ;;  %s1007_s9 = smov 8  }
  0x28   : > { %816 = dma.hbm_to_vmem [thread:$0]  (!%p1090_p11), %s1274_s1, 512, %s1083_s22, [#allocation6], %s1006_s8, %s1006_s8, %s1007_s9  }
  0x29   : > { %p25_p2 = scmp.eq.s32.totalorder %s24_s26, 0  ;;  %p34_p1 = scmp.ne.s32.totalorder %s999_s14, %s995_s13 }
  0x2a   : > { %p35_p4 = scmp.eq.s32.totalorder %s1003_s15, 0  ;;  %p826_p6 = scmp.lt.s32.totalorder %s1003_s15, 2 }
  0x2b   : > { %s1126_s17 = scalar_select %p25_p2, %s999_s14, %s27_s25  }
  0x2c   : > { %p36_p8 = por %p35_p4, %p34_p1  ;;  %p1284_p10 = scmp.eq.s32.totalorder %s1060_s16, 1 }
  0x2d   : > { %s148_s27 = sand.u32 1, %s999_s14   ;;  %s732_s28 = sshll.u32 %s1003_s15, 7 }
  0x2e   : > { %p1130_p12 = por %p1284_p10, %p34_p1  ;;  %s731_s29 = sshll.u32 %s148_s27, 3 }
  0x2f   : > { %s1139_s4 = scalar_lea.hbm %s1273_s0, %s732_s28  ;;  %s152_s22 = scalar_lea.vmem [#allocation2], %s731_s29 }
  0x30   : > { %s159_s25 = sshll.u32 %s152_s22, 4  ;;  %p1141_p11 = pnand %p826_p6, %p36_p8  ;;  %s1145_s25 = int_to_ptr.vmem [resolvable:$true] %s159_s25 }
  0x31   : > { %s149_s5 = scalar_lea.sflag [#allocation3], %s148_s27  ;;  %s903_s6 = scalar_lea.hbm %s1139_s4, 128 }
  0x32   : > { %p904_p13 = scmp.ne.s32.totalorder %s1139_s4, %s903_s6  ;;  %p905_p0 = pneg %p1141_p11 }
  0x33   : > { %s908_s9 = scalar_lea.hbm %s1273_s0, 256  ;;  %p909_p7 = scmp.lt.u32.totalorder %s1139_s4, %s1273_s0 }
  0x34   : > { %p906_p3 = pnand %p905_p0, %p904_p13  ;;  %p910_p9 = scmp.lt.u32.totalorder %s908_s9, %s903_s6 }
  0x35   : > { %p912_p1 = scmp.lt.u32.totalorder %s903_s6, %s1139_s4 }
  0x36   : > { %p907_p5 = pneg %p906_p3  ;;  %p911_p2 = por %p910_p9, %p909_p7 }
  0x38   : > { %p913_p4 = por %p912_p1, %p911_p2 }
  0x3a   : > { %p914_p6 = pnand %p913_p4, %p907_p5 }
  0x3c   : > { %917 = shalt.err (!%p914_p6)
}
  0x3d   : > { %s918_s27 = scalar_lea.vmem %s1145_s25, 128  ;;  %s1008_s28 = smov [#allocation2]  }
  0x3e   : > { %p919_p8 = scmp.ne.s32.totalorder %s1145_s25, %s918_s27  ;;  %s923_s29 = sshll.u32 %s1008_s28, 4  ;;  %s924_s29 = int_to_ptr.vmem [resolvable:$false] %s923_s29 }
  0x3f   : > { %s925_s23 = scalar_lea.vmem %s924_s29, 256  ;;  %p926_p3 = scmp.lt.s32.totalorder %s1145_s25, %s924_s29 }
  0x40   : > { %p921_p10 = pnand %p919_p8, %p905_p0  ;;  %p927_p7 = scmp.lt.s32.totalorder %s925_s23, %s918_s27 }
  0x42   : > { %p922_p13 = pneg %p921_p10  ;;  %p928_p9 = por %p927_p7, %p926_p3 }
  0x44   : > { %p929_p2 = pnand %p928_p9, %p922_p13 }
  0x46   : > { %932 = shalt.err (!%p929_p2)
}
  0x47   : > { %820 = dma.hbm_to_vmem [thread:$0]  (!%p1141_p11), %s1139_s4, 128, %s1145_s25, %s149_s5  }
  0x48   : > { %p1287_p5 = scmp.ne.s32.totalorder %s1282_s20, 0 }
  0x49   : > { %s1175_s30 = sand.u32 (!%p1287_p5), 1, %s995_s13   ;;  %p1288_p0 = scmp.ne.s32.totalorder (!%p1287_p5), %s1280_s18, 0 }
  0x4a   : > { %168 = sbr.rel (%p1287_p5) target bundleno = 1090 (0x442), region = 32  ;;  %s734_s22 = sshll.u32 (!%p1287_p5), %s1175_s30, 3 }
  0x4b   : > { %s171_s6 = scalar_lea.sflag (!%p1287_p5), [#allocation3], %s1175_s30  ;;  %s174_s7 = scalar_lea.vmem (!%p1287_p5), [#allocation2], %s734_s22 }
  0x51   : > { %978 = dma.done.wait (%p1288_p0), %s171_s6, 128  }
  0x52   : > { %980 = vsyncadd (%p1288_p0), %s171_s6, 4294967168  ;;  %p1289_p1 = scmp.eq.s32.totalorder %s1060_s16, 0 }
  0x54   : > { %982 = dma.done.wait (%p1289_p1), [#allocation6], 512   ;;  %p1290_p11 = pmov %p1289_p1 }
  0x55   : > { %v1009_v0 = vmov 0.0|0.0   ;;  %vm1010_vm0 = vmmov 0   ;;  %v1011_v1 = vmov 0.0   ;;  %v202_v2 = vld [vmem:[#allocation5] sm:$0xff]  ;;  %v203_v3 = vld [vmem:[#allocation5 + $0x8] sm:$0xff]  ;;  %v204_v4 = vld [vmem:[#allocation5 + $0x10] sm:$0xff] }
  0x56   : > { %984 = vsyncadd (%p1290_p11), [#allocation6], 4294966784  ;;  %799 = vmatprep.subr.bf16.mxu0 %v1009_v0  ;;  %776 = vmatprep.mubr.msk.f32.mxu0 %vm1010_vm0, %v1011_v1  ;;  %v800_v5 = vpack.c.bf16 %v203_v3, %v202_v2  ;;  %v205_v6 = vld [vmem:[#allocation5 + $0x18] sm:$0xff]  ;;  %vm211_vm1 = vcmask 261120   ;;  %v737_v9 = vld [vmem:[%s1275_s2] ss:$0 sm:$0xff] }
  0x57   : > { %779 = vmatprep.subr.mxu1 %v1011_v1  ;;  %781 = vmatprep.mubr.msk.f32.mxu1 %vm1010_vm0, %v1011_v1  ;;  %v803_v7 = vpack.c.bf16 %v205_v6, %v204_v4  ;;  %v201_v8 = vld [vmem:[%s174_s7] sm:$0xff]  ;;  %s1012_s8 = smov 32   ;;  %s1013_s9 = smov 96   ;;  %vm318_vm2 = vcmask 130048   ;;  %vm625_vm3 = vcmask 64512  }
  0x58   : > { %801 = vmatpush3.bf16.msra.mxu0 %v800_v5  ;;  %v739_v21 = vld [vmem:[%s1275_s2 + $0x1] ss:$0 sm:$0xff]  ;;  %v740_v23 = vld [vmem:[%s1275_s2 + $0x2] ss:$0 sm:$0xff]  ;;  %s1014_s10 = smov 64   ;;  %s1015_s11 = smov 112  }
  0x59   : > { %802 = vmatprep.subr.bf16.mxu0 %v1009_v0  ;;  %s736_s27 = sshll.u32 %s1175_s30, 5  ;;  %s754_s23 = sshll.u32 %s1060_s16, 9 }
  0x5a   : > { %s200_s28 = scalar_lea.vmem [#allocation7], %s736_s27  ;;  %s1228_s7 = scalar_lea.hbm %s1276_s3, %s754_s23 }
  0x5b   : > { %s644_s29 = sshll.u32 %s200_s28, 4  ;;  %s631_s18 = scalar_lea.sflag [#allocation4], %s1175_s30  ;;  %s1222_s29 = int_to_ptr.vmem [resolvable:$true] %s644_s29 }
  0x5c   : > { %804 = vmatpush3.bf16.msra.mxu0 %v803_v7  ;;  %s933_s20 = scalar_lea.vmem %s1222_s29, 512  ;;  %s1016_s16 = smov [#allocation7]  }
  0x5d   : > { %789 = vmatprep.subr.mxu0 %v1011_v1  ;;  %p934_p4 = scmp.ne.s32.totalorder %s1222_s29, %s933_s20  ;;  %s937_s4 = sshll.u32 %s1016_s16, 4  ;;  %s938_s4 = int_to_ptr.vmem [resolvable:$false] %s937_s4 }
  0x5e   : > { %s939_s25 = scalar_lea.vmem %s938_s4, 1024  ;;  %p940_p10 = scmp.lt.s32.totalorder %s1222_s29, %s938_s4 }
  0x5f   : > { %777 = vmatmul.mubr.msk.f32.vlgmr.msra.gmra.mrb[0].mxu0 %vm211_vm1, %v201_v8  ;;  %p935_p6 = pnand %p934_p4, %p1130_p12  ;;  %p941_p13 = scmp.lt.s32.totalorder %s939_s25, %s933_s20 }
  0x60   : > { %791 = vmatprep.mubr.msk.f32.mxu0 %vm1010_vm0, %v1011_v1 }
  0x61   : > { %p936_p8 = pneg %p935_p6  ;;  %p942_p3 = por %p941_p13, %p940_p10 }
  0x63   : > { %p943_p7 = pnand %p942_p3, %p936_p8 }
 0x132   : > { %v281_v10 = vpop.f32.mrb[0].mxu0 }
 0x133   : > { %v282_v11 = vadd.f32 %v737_v9, %v281_v10  ;;  %v778_v12 = vpop.f32.mrb[1].mxu0 }
 0x135   : > { %285 = vadd.xlane.f32.xlu0 %v282_v11 }
 0x1c2   : > { %v286_v13 = vpop.xlane.xlu0 %285 }
 0x1c3   : > { %v288_v14 = vmul.f32 0.0078125, %v286_v13 }
 0x1c5   : > { %v289_v15 = vsub.f32 %v282_v11, %v288_v14 }
 0x1c7   : > { %v290_v16 = vmul.f32 %v289_v15, %v289_v15 }
 0x1c9   : > { %291 = vadd.xlane.f32.xlu0 %v290_v16 }
 0x256   : > { %v292_v17 = vpop.xlane.xlu0 %291 }
 0x257   : > { %v293_v18 = vmul.f32 0.0078125, %v292_v17 }
 0x259   : > { %v294_v19 = vadd.f32 1e-05, %v293_v18 }
 0x25b   : > { %873 = vrsqrt.f32 %v294_v19 }
 0x265   : > { %v874_v20 = vpop.eup %873 }
 0x266   : > { %v296_v22 = vmul.f32 %v874_v20, %v289_v15 }
 0x268   : > { %v302_v24 = vmul.f32 %v739_v21, %v296_v22 }
 0x26a   : > { %v308_v25 = vadd.f32 %v740_v23, %v302_v24 }
 0x26c   : > { %314 = vrot.lane.b32.xlu0 %v308_v25, %s1012_s8  ;;  %310 = vrot.lane.b32.xlu1 %v308_v25, %s1013_s9 }
 0x270   : > { %312 = vrot.lane.b32.xlu1 %v308_v25, %s1014_s10 }
 0x274   : > { %316 = vrot.lane.b32.xlu1 %v308_v25, %s1015_s11 }
 0x2de   : > { %v311_v26 = vpop.permute.xlu1 %310  ;;  %v315_v28 = vpop.permute.xlu0 %314 }
 0x2df   : > { %393 = vrot.lane.b32.xlu1 %v311_v26, %s1015_s11 }
 0x2e2   : > { %v313_v27 = vpop.permute.xlu1 %312 }
 0x2e3   : > { %469 = vrot.lane.b32.xlu1 %v313_v27, %s1015_s11 }
 0x2e6   : > { %v317_v29 = vpop.permute.xlu1 %316 }
 0x2e7   : > { %545 = vrot.lane.b32.xlu1 %v315_v28, %s1015_s11  ;;  %780 = vmatpush3.xpose.msk.msra.mxu1 %vm318_vm2, %v317_v29 }
 0x2e8   : > { %784 = vmatprep.subr.mxu1 %v1011_v1 }
 0x2ea   : > { %782 = vmatmul.mubr.msk.f32.vlgmr.msra.gmra.mrb[0].mxu1 %vm318_vm2, %v308_v25 }
 0x2eb   : > { %786 = vmatprep.mubr.msk.f32.mxu1 %vm1010_vm0, %v1011_v1 }
 0x351   : > { %v394_v30 = vpop.permute.xlu1 %393 }
 0x352   : > { %785 = vmatpush3.xpose.msk.msra.mxu1 %vm318_vm2, %v394_v30 }
 0x353   : > { %794 = vmatprep.subr.mxu1 %v1011_v1 }
 0x355   : > { %787 = vmatmul.mubr.msk.f32.vlgmr.msra.gmra.mrb[2].mxu1 %vm318_vm2, %v311_v26  ;;  %v470_v31 = vpop.permute.xlu1 %469 }
 0x356   : > { %790 = vmatpush3.xpose.msk.msra.mxu0 %vm318_vm2, %v470_v31  ;;  %796 = vmatprep.mubr.msk.f32.mxu1 %vm1010_vm0, %v1011_v1 }
 0x359   : > { %792 = vmatmul.mubr.msk.f32.vlgmr.msra.gmra.mrb[2].mxu0 %vm318_vm2, %v313_v27  ;;  %v546_v32 = vpop.permute.xlu1 %545 }
 0x35a   : > { %795 = vmatpush3.xpose.msk.msra.mxu1 %vm318_vm2, %v546_v32 }
 0x35d   : > { %797 = vmatmul.mubr.msk.f32.vlgmr.msra.gmra.mrb[4].mxu1 %vm318_vm2, %v315_v28 }
 0x3bd   : > { %v389_v33 = vpop.f32.mrb[0].mxu1 }
 0x3be   : > { %v621_v34 = vmul.f32 0.25, %v389_v33  ;;  %v783_v35 = vpop.f32.mrb[1].mxu1 }
 0x3c0   : > { %626 = vst.msk [vmem:[%s200_s28] sm:$0xff] %vm625_vm3, %v621_v34 }
 0x428   : > { %v465_v36 = vpop.f32.mrb[2].mxu1 }
 0x429   : > { %v622_v37 = vmul.f32 0.25, %v465_v36  ;;  %v788_v38 = vpop.f32.mrb[3].mxu1 }
 0x42b   : > { %627 = vst.msk [vmem:[%s200_s28 + $0x8] sm:$0xff] %vm625_vm3, %v622_v37 }
 0x42c   : > { %v541_v39 = vpop.f32.mrb[2].mxu0 }
 0x42d   : > { %v623_v40 = vmul.f32 0.25, %v541_v39  ;;  %v793_v41 = vpop.f32.mrb[3].mxu0 }
 0x42f   : > { %628 = vst.msk [vmem:[%s200_s28 + $0x10] sm:$0xff] %vm625_vm3, %v623_v40 }
 0x430   : > { %v617_v42 = vpop.f32.mrb[4].mxu1 }
 0x431   : > { %v624_v43 = vmul.f32 0.25, %v617_v42  ;;  %v798_v44 = vpop.f32.mrb[5].mxu1 }
 0x433   : > { %629 = vst.msk [vmem:[%s200_s28 + $0x18] sm:$0xff] %vm625_vm3, %v624_v43 }
 0x434   : > { %946 = shalt.err (!%p943_p7)
}
 0x435   : > { %s947_s26 = scalar_lea.hbm %s1228_s7, 512  ;;  %s951_s9 = scalar_lea.hbm %s1276_s3, 1024 }
 0x436   : > { %p948_p9 = scmp.ne.s32.totalorder %s1228_s7, %s947_s26  ;;  %p952_p0 = scmp.lt.u32.totalorder %s1228_s7, %s1276_s3 }
 0x437   : > { %p953_p1 = scmp.lt.u32.totalorder %s951_s9, %s947_s26  ;;  %p955_p4 = scmp.lt.u32.totalorder %s947_s26, %s1228_s7 }
 0x438   : > { %p949_p2 = pnand %p948_p9, %p1130_p12 }
 0x439   : > { %p954_p11 = por %p953_p1, %p952_p0 }
 0x43a   : > { %p950_p5 = pneg %p949_p2 }
 0x43b   : > { %p956_p6 = por %p955_p4, %p954_p11 }
 0x43d   : > { %p957_p8 = pnand %p956_p6, %p950_p5 }
 0x43f   : > { %960 = shalt.err (!%p957_p8)
}
 0x440   : > { %s1017_s27 = smov 128   ;;  %s1018_s28 = smov 8  }
 0x441   : > { %811 = dma.vmem_to_hbm [thread:$0]  (%p1130_p12), %s1222_s29, 512, %s1228_s7, %s631_s18, %s1017_s27, %s1017_s27, %s1018_s28  }
 0x442 PF: > { %s659_s23 = sand.u32 1, %s991_s12   ;;  %p1291_p10 = scmp.ne.s32.totalorder %s1281_s19, 0 }
 0x443   : > { %p1292_p13 = scmp.ge.s32.totalorder %s1003_s15, 2  ;;  %s660_s22 = scalar_lea.sflag [#allocation4], %s659_s23 }
 0x445   : > { %p822_p3 = pnand %p1292_p13, %p1291_p10 }
 0x447   : > { %986 = dma.done.wait (!%p822_p3), %s660_s22, 512  }
 0x448   : > { %988 = vsyncadd (!%p822_p3), %s660_s22, 4294966784  ;;  %p17_p7 = scmp.ge.s32.totalorder %s1095_s24, 4   ;;  %s1293_s12 = smov %s995_s13 }
 0x449   : > { %s1294_s13 = smov %s999_s14  ;;  %s1295_s14 = smov %s1126_s17 }
 0x44a   : > { %s1296_s15 = smov %s1095_s24  ;;  %19 = sbr.rel (!%p17_p7) target bundleno = 6 (0x6), region = 81 }
 0x451   :  { %665 = vsyncpa [#allocation3], 1 }
 0x452   :  { %667 = vsyncpa [#allocation3 + $0x1], 1 }
 0x453   :  { %668 = vsyncpa [#allocation6], 1 }
 0x454   :  { %669 = vsyncpa [#allocation4], 1 }
 0x455   :  { %671 = vsyncpa [#allocation4 + $0x1], 1 }

</bundles_post_ra>
